<compile_context>
chip_gen: v5e
topology: v5e:2x2
jax: 0.10.0
libtpu: 0.0.40
codegen_flags: <defaults>
</compile_context>

<pallas_src>
import math

import jax
import jax.numpy as jnp
from jax.experimental import pallas as pl
from jax.experimental.pallas import tpu as pltpu

LANE = 128


def _round_up(x, m):
    return ((x + m - 1) // m) * m


def _propagate_kernel(a_ref, xw_ref, b_ref, o_ref):
    """One (row-tile, K-tile) step of  out = A_hat @ XW + b.

    a_ref : (tm, tk)  bf16   streamed A_hat tile (dominant HBM stream)
    xw_ref: (Nk, Fp)  bf16   resident XW slab (constant block index)
    b_ref : (1,  Fp)  f32    bias
    o_ref : (tm, Fp)  f32    resident output tile == accumulator
    """
    k = pl.program_id(1)
    tk = a_ref.shape[1]

    @pl.when(k == 0)
    def _():
        # Initialize the resident accumulator with the broadcast bias.
        o_ref[...] = jnp.broadcast_to(b_ref[...], o_ref.shape)

    start = pl.multiple_of(k * tk, tk)
    # bf16 x bf16 -> f32 accumulate on the MXU, straight into the output tile.
    o_ref[...] += jnp.dot(a_ref[...], xw_ref[pl.ds(start, tk), :],
                          preferred_element_type=jnp.float32)


def _propagate(a_pad, xw_pad, b_pad, *, tm, tk):
    """Tiled Pallas matmul: (Nr,Nk) bf16 @ (Nk,Fp) bf16 + (1,Fp) f32 -> (Nr,Fp) f32."""
    Nr, Nk = a_pad.shape
    Fp = xw_pad.shape[1]
    return pl.pallas_call(
        _propagate_kernel,
        out_shape=jax.ShapeDtypeStruct((Nr, Fp), jnp.float32),
        grid_spec=pltpu.PrefetchScalarGridSpec(
            num_scalar_prefetch=0,
            grid=(Nr // tm, Nk // tk),
            in_specs=[
                pl.BlockSpec((tm, tk), lambda i, k: (i, k)),   # A_hat tile (streamed)
                pl.BlockSpec((Nk, Fp), lambda i, k: (0, 0)),   # XW resident (loaded once)
                pl.BlockSpec((1, Fp), lambda i, k: (0, 0)),    # bias (resident)
            ],
            out_specs=pl.BlockSpec((tm, Fp), lambda i, k: (i, 0)),
        ),
        compiler_params=pltpu.CompilerParams(
            dimension_semantics=("parallel", "arbitrary"),
        ),
    )(a_pad, xw_pad, b_pad)


def sgconv_layer(a_pad, x, w_t, b, n_valid, *, tm, tk):
    """One SGConv layer on a pre-padded bf16 A_hat: A_hat @ (x @ w_t) + b."""
    Nr, Nk = a_pad.shape
    F_out = w_t.shape[1]
    Fp = _round_up(F_out, LANE)

    # Reassociated feature transform: tiny matmul, plain XLA, f32.
    xw = jnp.dot(x, w_t, preferred_element_type=jnp.float32)

    # Pad rows to Nk (A_hat's column count), features to a full 128-lane slab.
    xw_pad = jnp.zeros((Nk, Fp), jnp.bfloat16).at[:n_valid, :F_out].set(
        xw.astype(jnp.bfloat16))
    b_pad = jnp.zeros((1, Fp), jnp.float32).at[0, :F_out].set(b)

    out_pad = _propagate(a_pad, xw_pad, b_pad, tm=tm, tk=tk)
    # Padded rows hold only the bias; slice them (and padded lanes) away.
    return out_pad[:n_valid, :F_out]


def build_norm_adj_padded(edge_index, num_nodes, n_rows, n_cols,
                          dtype=jnp.bfloat16):
    """Single-pass padded bf16 construction of D^{-1/2}(A+I)D^{-1/2}.

    O(E) degree scatter + one scatter of normalized edge weights directly into
    the padded (n_rows, n_cols) buffer.  Self-loops are added only where
    missing (add_remaining_self_loops semantics); multi-edges accumulate.
    """
    src = edge_index[0]
    dst = edge_index[1]

    ones = jnp.ones(src.shape, jnp.float32)
    # degree = #edges into node (incl. existing self-loops) + 1 if no self-loop
    deg = jnp.zeros((num_nodes,), jnp.float32).at[dst].add(ones)
    self_cnt = jnp.zeros((num_nodes,), jnp.float32).at[dst].add(
        jnp.where(src == dst, 1.0, 0.0))
    has_self = self_cnt > 0
    deg = deg + jnp.where(has_self, 0.0, 1.0)
    dinv = jax.lax.rsqrt(jnp.maximum(deg, 1e-12))  # deg >= 1 always

    # Single N^2-sized write pass: scatter normalized edge weights.
    vals = (dinv[dst] * dinv[src]).astype(dtype)
    a_pad = jnp.zeros((n_rows, n_cols), dtype)
    a_pad = a_pad.at[dst, src].add(vals)
    # Add the missing self-loops on the diagonal.
    idx = jnp.arange(num_nodes)
    diag_vals = jnp.where(has_self, 0.0, dinv * dinv).astype(dtype)
    a_pad = a_pad.at[idx, idx].add(diag_vals)
    return a_pad


def sgc_forward(x, edge_index, params, *, tm=512, tk=2048):
    """Two-layer SGC forward, matching the PyTorch module."""
    N = x.shape[0]

    # Clamp tiles for small graphs; pad rows / K-columns independently.
    np_lane = _round_up(N, LANE)
    tm = min(tm, np_lane)
    tk = min(tk, np_lane)
    Nr = _round_up(N, tm)   # output / A rows
    Nk = _round_up(N, tk)   # reduction axis (A cols == XW rows)
    # Keep >= 2 row tiles when possible so both TensorCores (v7x) get work.
    if Nr // tm < 2 and Nr >= 2 * LANE:
        tm = Nr // 2        # Nr is a multiple of 128, so tm stays a multiple of 8

    # A_hat built once, directly padded & bf16; streamed by both layers.
    a_pad = build_norm_adj_padded(edge_index, N, Nr, Nk)

    h = sgconv_layer(a_pad, x, params["w1_t"], params["b1"], N, tm=tm, tk=tk)
    out = sgconv_layer(a_pad, h, params["w2_t"], params["b2"], N, tm=tm, tk=tk)
    return out


def sgc_reference(x, edge_index, params):
    """Pure-JAX f32 dense reference (same semantics, no Pallas / no bf16)."""
    N = x.shape[0]
    src, dst = edge_index[0], edge_index[1]
    A = jnp.zeros((N, N), jnp.float32).at[dst, src].add(1.0)
    diag_idx = jnp.arange(N)
    diag = jnp.diagonal(A)
    A = A.at[diag_idx, diag_idx].set(jnp.where(diag > 0, diag, 1.0))
    deg = A.sum(axis=1)
    dinv = jnp.where(deg > 0, 1.0 / jnp.sqrt(deg), 0.0)
    a_hat = dinv[:, None] * A * dinv[None, :]
    h = a_hat @ (x @ params["w1_t"]) + params["b1"][None, :]
    return a_hat @ (h @ params["w2_t"]) + params["b2"][None, :]


def init_params(key, num_features, hidden_size, output_size):
    k1, k2, k3, k4 = jax.random.split(key, 4)
    # torch Linear(in, out) weight is [out, in]; we store it transposed [in, out]
    w1_t = 0.1 * jax.random.normal(k1, (num_features, hidden_size), jnp.float32)
    b1 = 0.1 * jax.random.normal(k2, (hidden_size,), jnp.float32)
    w2_t = 0.1 * jax.random.normal(k3, (hidden_size, output_size), jnp.float32)
    b2 = 0.1 * jax.random.normal(k4, (output_size,), jnp.float32)
    return {"w1_t": w1_t, "b1": b1, "w2_t": w2_t, "b2": b2}


if __name__ == "__main__":
    key = jax.random.PRNGKey(0)
    kx, kp = jax.random.split(key)

    # Small synthetic graph: N nodes on a bidirectional ring.
    N = 16
    num_features = 8
    hidden_size = 32
    output_size = 16

    idx = jnp.arange(N, dtype=jnp.int32)
    src = jnp.concatenate([idx, (idx + 1) % N])
    dst = jnp.concatenate([(idx + 1) % N, idx])
    edge_index = jnp.stack([src, dst], axis=0)  # [2, 2N]

    x = jax.random.normal(kx, (N, num_features), jnp.float32)
    params = init_params(kp, num_features, hidden_size, output_size)

    out = jax.jit(sgc_forward)(x, edge_index, params)
    jax.block_until_ready(out)

    assert out.shape == (N, output_size)
    assert out.dtype == jnp.float32

    # Loose tolerance: A_hat / XW are intentionally streamed in bf16.
    ref = sgc_reference(x, edge_index, params)
    assert jnp.max(jnp.abs(out - ref)) < 5e-2

    print("KERNEL_OK")
</pallas_src>

<mosaic_0001>
module attributes {stable_mosaic.version = 11 : i64} {
  func.func @_propagate_kernel(%arg0: i32, %arg1: i32, %arg2: memref<128x128xbf16, #tpu.memory_space<vmem>>, %arg3: memref<128x128xbf16, #tpu.memory_space<vmem>>, %arg4: memref<1x128xf32, #tpu.memory_space<vmem>>, %arg5: memref<128x128xf32, #tpu.memory_space<vmem>>) attributes {dimension_semantics = [#tpu.dimension_semantics<parallel>, #tpu.dimension_semantics<arbitrary>], iteration_bounds = array<i64: 1, 1>, scalar_prefetch = 0 : i64, scratch_operands = 0 : i64, tpu.core_type = #tpu.core_type<tc>, window_params = [{transform_indices = @transform_0, window_bounds = array<i64: 128, 128>}, {pipeline_mode = #tpu.pipeline_mode<synchronous>, transform_indices = @transform_1, window_bounds = array<i64: 128, 128>}, {pipeline_mode = #tpu.pipeline_mode<synchronous>, transform_indices = @transform_2, window_bounds = array<i64: 1, 128>}, {transform_indices = @transform_3, window_bounds = array<i64: 128, 128>}]} {
    %c0_i32 = arith.constant 0 : i32
    %0 = arith.cmpi eq, %arg1, %c0_i32 : i32
    %1 = arith.extui %0 : i1 to i32
    %c0_i32_0 = arith.constant 0 : i32
    %2 = arith.cmpi ne, %1, %c0_i32_0 : i32
    scf.if %2 {
      %c0_7 = arith.constant 0 : index
      %c0_8 = arith.constant 0 : index
      %12 = vector.load %arg4[%c0_7, %c0_8] : memref<1x128xf32, #tpu.memory_space<vmem>>, vector<1x128xf32>
      %13 = vector.shape_cast %12 : vector<1x128xf32> to vector<1x128xf32>
      %14 = vector.broadcast %13 : vector<1x128xf32> to vector<128x128xf32>
      %c0_9 = arith.constant 0 : index
      %c0_10 = arith.constant 0 : index
      %15 = vector.load %arg5[%c0_9, %c0_10] : memref<128x128xf32, #tpu.memory_space<vmem>>, vector<128x128xf32>
      tpu.vector_store %arg5[%c0_9, %c0_10], %14 {strides = array<i32>} : memref<128x128xf32, #tpu.memory_space<vmem>>, vector<128x128xf32>,
    } else {
    }
    %c128_i32 = arith.constant 128 : i32
    %3 = arith.muli %arg1, %c128_i32 : i32
    %4 = tpu.assume_multiple %3, 128 : i32
    %c0 = arith.constant 0 : index
    %c0_1 = arith.constant 0 : index
    %5 = vector.load %arg5[%c0, %c0_1] : memref<128x128xf32, #tpu.memory_space<vmem>>, vector<128x128xf32>
    %c0_2 = arith.constant 0 : index
    %c0_3 = arith.constant 0 : index
    %6 = vector.load %arg2[%c0_2, %c0_3] : memref<128x128xbf16, #tpu.memory_space<vmem>>, vector<128x128xbf16>
    %7 = arith.index_cast %4 : i32 to index
    %c0_4 = arith.constant 0 : index
    %8 = vector.load %arg3[%7, %c0_4] : memref<128x128xbf16, #tpu.memory_space<vmem>>, vector<128x128xbf16>
    %cst = arith.constant dense<0.000000e+00> : vector<128x128xf32>
    %9 = tpu.matmul %6, %8, %cst {dimension_numbers = #tpu.dot_dimension_numbers<[1], [0], [0], [1], [0, 0, 1, 1], [], []>} : vector<128x128xbf16>, vector<128x128xbf16>, vector<128x128xf32> -> vector<128x128xf32>
    %10 = arith.addf %5, %9 : vector<128x128xf32>
    %c0_5 = arith.constant 0 : index
    %c0_6 = arith.constant 0 : index
    %11 = vector.load %arg5[%c0_5, %c0_6] : memref<128x128xf32, #tpu.memory_space<vmem>>, vector<128x128xf32>
    tpu.vector_store %arg5[%c0_5, %c0_6], %10 {strides = array<i32>} : memref<128x128xf32, #tpu.memory_space<vmem>>, vector<128x128xf32>,
    return
  }
  func.func @transform_0(%arg0: i32, %arg1: i32) -> (i32, i32) {
    %c0_i32 = arith.constant 0 : i32
    return %arg0, %arg1 : i32, i32
  }
  func.func @transform_1(%arg0: i32, %arg1: i32) -> (i32, i32) {
    %c0_i32 = arith.constant 0 : i32
    %c0_i32_0 = arith.constant 0 : i32
    %c0_i32_1 = arith.constant 0 : i32
    return %c0_i32, %c0_i32_0 : i32, i32
  }
  func.func @transform_2(%arg0: i32, %arg1: i32) -> (i32, i32) {
    %c0_i32 = arith.constant 0 : i32
    %c0_i32_0 = arith.constant 0 : i32
    %c0_i32_1 = arith.constant 0 : i32
    return %c0_i32, %c0_i32_0 : i32, i32
  }
  func.func @transform_3(%arg0: i32, %arg1: i32) -> (i32, i32) {
    %c0_i32 = arith.constant 0 : i32
    %c0_i32_0 = arith.constant 0 : i32
    return %arg0, %c0_i32 : i32, i32
  }
}

</mosaic_0001>

<bundles_post_ra>
// kernel: sgc_forward.2
= control target key start
LH: loop header
LB: loop body
LE: loop exit
PB: predicated region body
PF: predicated region fallthrough
CT: control target
= control target key end

     0   :  { %s498_s1 = inlined_call_operand.vmem [shape: bf16[128,128], index: 1, kind: input, shape index: {}]   ;;  %s499_s2 = inlined_call_operand.vmem [shape: f32[1,128], index: 2, kind: input, shape index: {}]   ;;  %s500_s0 = inlined_call_operand.vmem [shape: bf16[128,128], index: 0, kind: input, shape index: {}]   ;;  %s501_s3 = inlined_call_operand.vmem [shape: f32[128,128], index: 3, kind: output, shape index: {}]  }
   0x1   :  { %v353_v0 = vld [vmem:[%s498_s1 + $0x38] sm:$0xff]  ;;  %v352_v1 = vld [vmem:[%s498_s1 + $0x30] sm:$0xff]  ;;  %v351_v2 = vld [vmem:[%s498_s1 + $0x28] sm:$0xff] }
   0x2   :  { %187 = vmatpush.bf16.msra.mxu0 %v353_v0  ;;  %354 = vmatpush.bf16.msra.mxu1 %v353_v0  ;;  %v350_v3 = vld [vmem:[%s498_s1 + $0x20] sm:$0xff]  ;;  %v349_v4 = vld [vmem:[%s498_s1 + $0x18] sm:$0xff]  ;;  %v348_v5 = vld [vmem:[%s498_s1 + $0x10] sm:$0xff] }
   0x3   :  { %355 = vmatpush.bf16.msra.mxu2 %v353_v0  ;;  %356 = vmatpush.bf16.msra.mxu3 %v353_v0  ;;  %v347_v6 = vld [vmem:[%s498_s1 + $0x8] sm:$0xff]  ;;  %v346_v7 = vld [vmem:[%s498_s1] sm:$0xff]  ;;  %v340_v9 = vld [vmem:[%s500_s0 + $0x10] sm:$0xff] }
   0x4   :  { %v338_v8 = vld [vmem:[%s500_s0] sm:$0xff]  ;;  %v344_v11 = vld [vmem:[%s500_s0 + $0x30] sm:$0xff]  ;;  %v339_v12 = vld [vmem:[%s500_s0 + $0x8] sm:$0xff] }
   0x5   :  { %v342_v10 = vld [vmem:[%s500_s0 + $0x20] sm:$0xff]  ;;  %v341_v13 = vld [vmem:[%s500_s0 + $0x18] sm:$0xff]  ;;  %v343_v14 = vld [vmem:[%s500_s0 + $0x28] sm:$0xff] }
   0x6   :  { %188 = vmatpush.bf16.msra.mxu0 %v352_v1  ;;  %357 = vmatpush.bf16.msra.mxu1 %v352_v1  ;;  %v345_v15 = vld [vmem:[%s500_s0 + $0x38] sm:$0xff]  ;;  %v378_v16 = vld [vmem:[%s499_s2] ss:$0 sm:$0xff] }
   0x7   :  { %358 = vmatpush.bf16.msra.mxu2 %v352_v1  ;;  %359 = vmatpush.bf16.msra.mxu3 %v352_v1 }
   0xa   :  { %189 = vmatpush.bf16.msra.mxu0 %v351_v2  ;;  %360 = vmatpush.bf16.msra.mxu1 %v351_v2 }
   0xb   :  { %361 = vmatpush.bf16.msra.mxu2 %v351_v2  ;;  %362 = vmatpush.bf16.msra.mxu3 %v351_v2 }
   0xe   :  { %190 = vmatpush.bf16.msra.mxu0 %v350_v3  ;;  %363 = vmatpush.bf16.msra.mxu1 %v350_v3 }
   0xf   :  { %364 = vmatpush.bf16.msra.mxu2 %v350_v3  ;;  %365 = vmatpush.bf16.msra.mxu3 %v350_v3 }
  0x12   :  { %191 = vmatpush.bf16.msra.mxu0 %v349_v4  ;;  %366 = vmatpush.bf16.msra.mxu1 %v349_v4 }
  0x13   :  { %367 = vmatpush.bf16.msra.mxu2 %v349_v4  ;;  %368 = vmatpush.bf16.msra.mxu3 %v349_v4 }
  0x16   :  { %192 = vmatpush.bf16.msra.mxu0 %v348_v5  ;;  %369 = vmatpush.bf16.msra.mxu1 %v348_v5 }
  0x17   :  { %370 = vmatpush.bf16.msra.mxu2 %v348_v5  ;;  %371 = vmatpush.bf16.msra.mxu3 %v348_v5 }
  0x1a   :  { %193 = vmatpush.bf16.msra.mxu0 %v347_v6  ;;  %372 = vmatpush.bf16.msra.mxu1 %v347_v6 }
  0x1b   :  { %373 = vmatpush.bf16.msra.mxu2 %v347_v6  ;;  %374 = vmatpush.bf16.msra.mxu3 %v347_v6 }
  0x1e   :  { %194 = vmatpush.bf16.msra.mxu0 %v346_v7  ;;  %375 = vmatpush.bf16.msra.mxu1 %v346_v7 }
  0x1f   :  { %376 = vmatpush.bf16.msra.mxu2 %v346_v7  ;;  %377 = vmatpush.bf16.msra.mxu3 %v346_v7 }
  0x21   :  { %195 = vmatmul.bf16.vlgmr.msra.gmra.mxu0 %v338_v8  ;;  %205 = vmatmul.bf16.vlgmr.msra.gmra.mxu1 %v340_v9 }
  0x22   :  { %215 = vmatmul.bf16.vlgmr.msra.gmra.mxu2 %v342_v10  ;;  %225 = vmatmul.bf16.vlgmr.msra.gmra.mxu3 %v344_v11 }
  0x31   :  { %200 = vmatmul.bf16.gmra.mxu0 %v339_v12  ;;  %210 = vmatmul.bf16.gmra.mxu1 %v341_v13 }
  0x32   :  { %220 = vmatmul.bf16.gmra.mxu2 %v343_v14  ;;  %230 = vmatmul.bf16.gmra.mxu3 %v345_v15 }
  0x9e   :  { %v196_v17 = vpop.f32.mrf.mxu0  ;;  %v206_v18 = vpop.f32.mrf.mxu1 }
  0x9f   :  { %v236_v19 = vadd.f32 %v378_v16, %v196_v17  ;;  %v240_v20 = vadd.f32 %v378_v16, %v206_v18 }
  0xa1   :  { %252 = vst [vmem:[%s501_s3] sm:$0xff] %v236_v19 }
  0xa2   :  { %256 = vst [vmem:[%s501_s3 + $0x20] sm:$0xff] %v240_v20 }
  0xa5   :  { %v216_v21 = vpop.f32.mrf.mxu2  ;;  %v226_v22 = vpop.f32.mrf.mxu3 }
  0xa6   :  { %v244_v23 = vadd.f32 %v378_v16, %v216_v21  ;;  %v248_v24 = vadd.f32 %v378_v16, %v226_v22  ;;  %v198_v25 = vpop.f32.mrf.mxu0  ;;  %v208_v26 = vpop.f32.mrf.mxu1 }
  0xa7   :  { %v237_v27 = vadd.f32 %v378_v16, %v198_v25  ;;  %v241_v28 = vadd.f32 %v378_v16, %v208_v26 }
  0xa8   :  { %260 = vst [vmem:[%s501_s3 + $0x40] sm:$0xff] %v244_v23 }
  0xa9   :  { %264 = vst [vmem:[%s501_s3 + $0x60] sm:$0xff] %v248_v24 }
  0xaa   :  { %253 = vst [vmem:[%s501_s3 + $0x8] sm:$0xff] %v237_v27 }
  0xab   :  { %257 = vst [vmem:[%s501_s3 + $0x28] sm:$0xff] %v241_v28 }
  0xad   :  { %v218_v29 = vpop.f32.mrf.mxu2  ;;  %v228_v30 = vpop.f32.mrf.mxu3 }
  0xae   :  { %v245_v31 = vadd.f32 %v378_v16, %v218_v29  ;;  %v249_v32 = vadd.f32 %v378_v16, %v228_v30  ;;  %v201_v33 = vpop.f32.mrf.mxu0  ;;  %v211_v34 = vpop.f32.mrf.mxu1 }
  0xaf   :  { %v238_v35 = vadd.f32 %v378_v16, %v201_v33  ;;  %v242_v36 = vadd.f32 %v378_v16, %v211_v34 }
  0xb0   :  { %261 = vst [vmem:[%s501_s3 + $0x48] sm:$0xff] %v245_v31 }
  0xb1   :  { %265 = vst [vmem:[%s501_s3 + $0x68] sm:$0xff] %v249_v32 }
  0xb2   :  { %254 = vst [vmem:[%s501_s3 + $0x10] sm:$0xff] %v238_v35 }
  0xb3   :  { %258 = vst [vmem:[%s501_s3 + $0x30] sm:$0xff] %v242_v36 }
  0xb5   :  { %v221_v37 = vpop.f32.mrf.mxu2  ;;  %v231_v38 = vpop.f32.mrf.mxu3 }
  0xb6   :  { %v246_v39 = vadd.f32 %v378_v16, %v221_v37  ;;  %v250_v40 = vadd.f32 %v378_v16, %v231_v38  ;;  %v203_v41 = vpop.f32.mrf.mxu0  ;;  %v213_v42 = vpop.f32.mrf.mxu1 }
  0xb7   :  { %v239_v43 = vadd.f32 %v378_v16, %v203_v41  ;;  %v243_v44 = vadd.f32 %v378_v16, %v213_v42 }
  0xb8   :  { %262 = vst [vmem:[%s501_s3 + $0x50] sm:$0xff] %v246_v39 }
  0xb9   :  { %266 = vst [vmem:[%s501_s3 + $0x70] sm:$0xff] %v250_v40 }
  0xba   :  { %255 = vst [vmem:[%s501_s3 + $0x18] sm:$0xff] %v239_v43 }
  0xbb   :  { %259 = vst [vmem:[%s501_s3 + $0x38] sm:$0xff] %v243_v44 }
  0xbd   :  { %v223_v45 = vpop.f32.mrf.mxu2  ;;  %v233_v46 = vpop.f32.mrf.mxu3 }
  0xbe   :  { %v247_v47 = vadd.f32 %v378_v16, %v223_v45  ;;  %v251_v48 = vadd.f32 %v378_v16, %v233_v46 }
  0xc0   :  { %263 = vst [vmem:[%s501_s3 + $0x58] sm:$0xff] %v247_v47 }
  0xc1   :  { %267 = vst [vmem:[%s501_s3 + $0x78] sm:$0xff] %v251_v48 }

</bundles_post_ra>
